<compile_context>
chip_gen: v7x
topology: tpu7x:2x2x1
jax: 0.10.0
libtpu: 0.0.40
codegen_flags: <defaults>
</compile_context>

<pallas_src>
import functools
import math

import jax
import jax.numpy as jnp
from jax.experimental import pallas as pl
from jax.experimental.pallas import tpu as pltpu


def _mha_kernel(bias_ref, q_ref, k_ref, v_ref,
                wq_ref, bq_ref, wk_ref, bk_ref, wv_ref, bv_ref,
                wp_ref, bp_ref, out_ref, *, num_heads):
    nb, s, d = q_ref.shape
    t = k_ref.shape[1]
    h = num_heads
    dh = d // h
    bf16 = jnp.bfloat16

    xq = q_ref[...].reshape(nb * s, d)
    xk = k_ref[...].reshape(nb * t, d)
    xv = v_ref[...].reshape(nb * t, d)

    # Fused full-width projections (MXU N-dim = D). Scale already folded into wq/bq.
    q = (jnp.dot(xq, wq_ref[...], preferred_element_type=jnp.float32)
         + bq_ref[...]).astype(bf16)                          # (NB*S, D)
    k = (jnp.dot(xk, wk_ref[...], preferred_element_type=jnp.float32)
         + bk_ref[...]).astype(bf16)                          # (NB*T, D)
    v = (jnp.dot(xv, wv_ref[...], preferred_element_type=jnp.float32)
         + bv_ref[...]).astype(bf16)                          # (NB*T, D)

    # Head split: static lane slices + leading-axis stack (pure layout ops,
    # no per-head matmuls / casts / broadcasts).
    def split_heads(x, rows):
        return jnp.stack(
            [x[:, i * dh:(i + 1) * dh].reshape(nb, rows, dh) for i in range(h)],
            axis=0).reshape(h * nb, rows, dh)

    qh = split_heads(q, s)                                    # (H*NB, S, Dh)
    kh = split_heads(k, t)                                    # (H*NB, T, Dh)
    vh = split_heads(v, t)                                    # (H*NB, T, Dh)

    # Head-batched attention scores; additive mask bias broadcast exactly once.
    scores = jnp.einsum("bqd,bkd->bqk", qh, kh,
                        preferred_element_type=jnp.float32)   # (H*NB, S, T)
    scores = scores + bias_ref[...][None, :, :]

    # Numerically-stable softmax; normalization deferred past the PV matmul.
    m = jnp.max(scores, axis=-1, keepdims=True)
    e = jnp.exp(scores - m)                                   # (H*NB, S, T)
    l = jnp.sum(e, axis=-1, keepdims=True)                    # (H*NB, S, 1)

    y = jnp.einsum("bqk,bkd->bqd", e.astype(bf16), vh,
                   preferred_element_type=jnp.float32)        # (H*NB, S, Dh)
    y = y * pl.reciprocal(l, approx=True)

    # Merge heads (lane concat, head-major column order) and do ONE full-width
    # output projection straight into out_ref — no f32 accumulator scratch.
    y = y.reshape(h, nb, s, dh)
    y_cat = jnp.concatenate([y[i] for i in range(h)], axis=-1)    # (NB, S, D)
    out = (jnp.dot(y_cat.reshape(nb * s, d).astype(bf16), wp_ref[...],
                   preferred_element_type=jnp.float32) + bp_ref[...])
    out_ref[...] = out.reshape(nb, s, d).astype(out_ref.dtype)


def multi_head_attention(query, key, value, attn_mask, params, num_heads,
                         *, batch_block=None, rows_target=256):
    """query: (N,S,D), key/value: (N,T,D), attn_mask: (S,T) (0 = masked out)."""
    N, S, D = query.shape
    T = key.shape[1]
    assert D % num_heads == 0
    H = num_heads
    Dh = D // H
    scale = 1.0 / math.sqrt(Dh)
    bf16, f32 = jnp.bfloat16, jnp.float32

    # ---- per-grid-step VMEM accounting (used to pick NB and vmem_limit_bytes).
    def step_bytes(nb):
        act_in = 2 * 2 * nb * (S + 2 * T) * D                 # bf16 acts, double-buffered
        out_buf = 2 * nb * S * D * 4                          # f32 out block, double-buffered
        weights = 4 * D * D * 2 + 4 * D * 4 + S * T * 4       # single-buffered weights/mask
        proj = nb * (S + 2 * T) * D * (4 + 2 + 2)             # f32 proj + bf16 + head stack
        attn_tmp = nb * H * S * T * (4 + 4 + 2)               # scores, exp(f32), exp(bf16)
        y_tmp = nb * S * D * (4 + 2 + 2)                      # PV out, head concat, bf16
        return act_in + out_buf + weights + proj + attn_tmp + y_tmp

    try:
        vmem_cap = int(pltpu.get_tpu_info().vmem_capacity_bytes)
    except Exception:
        vmem_cap = 64 * 1024 * 1024                           # v7x floor; safe everywhere
    vmem_budget = int(0.75 * vmem_cap)

    def largest_divisor_le(n, ub):
        ub = max(1, min(n, ub))
        while n % ub:
            ub -= 1
        return ub

    if batch_block is None:
        nb = largest_divisor_le(N, pl.cdiv(rows_target, S))
        # Keep >= 2 grid steps when N allows: v7x shards the "parallel" batch
        # axis across its two TensorCores.
        if N >= 2 and N // nb < 2:
            nb = largest_divisor_le(N, N // 2)
        # Shrink until the per-step working set fits the VMEM budget.
        while nb > 1 and step_bytes(nb) > vmem_budget:
            nb = largest_divisor_le(N, nb - 1)
        batch_block = nb
    NB = batch_block
    assert N % NB == 0, "batch_block must divide N"
    grid = (N // NB,)
    vmem_limit = int(min(max(2 * step_bytes(NB), 32 * 1024 * 1024), vmem_budget))

    # One-time parameter re-layout (in production, do this at init, not per call).
    # torch.nn.Linear weights are (out, in)  ->  use W.T so columns are output
    # features (head-major order matches the reference reshape). Scale folded in.
    wq_full = (params["wq"].T * scale).astype(bf16)           # (D, D)
    wk_full = params["wk"].T.astype(bf16)                     # (D, D)
    wv_full = params["wv"].T.astype(bf16)                     # (D, D)
    wp_full = params["wp"].T.astype(bf16)                     # (D, D)
    bq = (params["bq"] * scale).reshape(1, D).astype(f32)
    bk = params["bk"].reshape(1, D).astype(f32)
    bv = params["bv"].reshape(1, D).astype(f32)
    bp = params["bp"].reshape(1, D).astype(f32)

    # Additive mask bias; large finite negative avoids -inf -> NaN on fully-masked rows.
    bias = jnp.where(attn_mask == 0, -1e30, 0.0).astype(f32)

    q_bf = query.astype(bf16)
    k_bf = key.astype(bf16)
    v_bf = value.astype(bf16)

    flops = (2 * N * S * D * D + 2 * 2 * N * T * D * D        # q/k/v projections
             + 2 * 2 * N * H * S * T * Dh                     # scores + PV matmuls
             + 2 * N * S * D * D)                             # output projection
    transcendentals = N * H * S * T                           # exp
    bytes_accessed = (2 * (query.size + key.size + value.size)  # bf16 activations
                      + 4 * D * D * 2 + 4 * D * 4               # weights + biases
                      + S * T * 4 + N * S * D * 4)              # mask bias + f32 output

    # Grid-invariant blocks: single-buffered (no pointless weight duplication).
    def inv(shape):
        return pl.BlockSpec(shape, lambda n: (0,) * len(shape),
                            pipeline_mode=pl.Buffered(1))

    return pl.pallas_call(
        functools.partial(_mha_kernel, num_heads=H),
        out_shape=jax.ShapeDtypeStruct((N, S, D), jnp.float32),
        grid_spec=pltpu.PrefetchScalarGridSpec(
            num_scalar_prefetch=0,
            grid=grid,
            in_specs=[
                inv((S, T)),                                    # mask bias
                pl.BlockSpec((NB, S, D), lambda n: (n, 0, 0)),  # query
                pl.BlockSpec((NB, T, D), lambda n: (n, 0, 0)),  # key
                pl.BlockSpec((NB, T, D), lambda n: (n, 0, 0)),  # value
                inv((D, D)), inv((1, D)),                       # Wq, bq
                inv((D, D)), inv((1, D)),                       # Wk, bk
                inv((D, D)), inv((1, D)),                       # Wv, bv
                inv((D, D)), inv((1, D)),                       # Wp, bp
            ],
            out_specs=pl.BlockSpec((NB, S, D), lambda n: (n, 0, 0)),
        ),
        compiler_params=pltpu.CompilerParams(
            dimension_semantics=("parallel",),
            vmem_limit_bytes=vmem_limit,
        ),
        cost_estimate=pl.CostEstimate(
            flops=flops,
            transcendentals=transcendentals,
            bytes_accessed=bytes_accessed,
        ),
    )(bias, q_bf, k_bf, v_bf,
      wq_full, bq, wk_full, bk, wv_full, bv, wp_full, bp)


def _reference(query, key, value, attn_mask, params, num_heads):
    """Pure-JAX f32 reference mirroring the PyTorch forward (dropout = identity)."""
    N, S, D = query.shape
    T = key.shape[1]
    H = num_heads
    Dh = D // H
    lin = lambda x, w, b: jnp.einsum("nsd,ed->nse", x, w) + b
    Q = lin(query, params["wq"], params["bq"]).reshape(N, S, H, Dh).transpose(0, 2, 1, 3)
    K = lin(key, params["wk"], params["bk"]).reshape(N, T, H, Dh).transpose(0, 2, 3, 1)
    V = lin(value, params["wv"], params["bv"]).reshape(N, T, H, Dh).transpose(0, 2, 1, 3)
    scores = jnp.matmul(Q, K) / math.sqrt(Dh)
    scores = jnp.where(attn_mask[None, None] == 0, -jnp.inf, scores)
    attn = jax.nn.softmax(scores, axis=-1)
    y = jnp.matmul(attn, V).transpose(0, 2, 1, 3).reshape(N, S, D)
    return jnp.einsum("nsd,ed->nse", y, params["wp"]) + params["bp"]


if __name__ == "__main__":
    # Small shapes consistent with the module: batch=2, seq=8, embed=32, heads=2.
    N, S, T, D, H = 2, 8, 8, 32, 2

    key0 = jax.random.PRNGKey(0)
    ks = jax.random.split(key0, 12)

    # Deterministic synthetic parameters; torch.nn.Linear weights are (out, in).
    bound = 1.0 / math.sqrt(D)
    params = {
        "wq": jax.random.uniform(ks[0], (D, D), jnp.float32, -bound, bound),
        "bq": jax.random.uniform(ks[1], (D,), jnp.float32, -bound, bound),
        "wk": jax.random.uniform(ks[2], (D, D), jnp.float32, -bound, bound),
        "bk": jax.random.uniform(ks[3], (D,), jnp.float32, -bound, bound),
        "wv": jax.random.uniform(ks[4], (D, D), jnp.float32, -bound, bound),
        "bv": jax.random.uniform(ks[5], (D,), jnp.float32, -bound, bound),
        "wp": jax.random.uniform(ks[6], (D, D), jnp.float32, -bound, bound),
        "bp": jax.random.uniform(ks[7], (D,), jnp.float32, -bound, bound),
    }

    query = jax.random.normal(ks[8], (N, S, D), jnp.float32)
    key_in = jax.random.normal(ks[9], (N, T, D), jnp.float32)
    value = jax.random.normal(ks[10], (N, T, D), jnp.float32)

    # Causal mask (S, T): 0 => token i cannot attend to token j.
    attn_mask = jnp.tril(jnp.ones((S, T), jnp.float32))

    out = multi_head_attention(query, key_in, value, attn_mask, params, num_heads=H)
    out = jax.block_until_ready(out)

    ref = _reference(query, key_in, value, attn_mask, params, num_heads=H)
    assert out.shape == (N, S, D)
    # bf16 MXU operands + approx reciprocal => compare at bf16-appropriate tolerance.
    assert jnp.allclose(out, ref, atol=5e-2, rtol=5e-2), "Pallas output mismatch vs reference"

    print("KERNEL_OK")
</pallas_src>

<mosaic_0001>
module attributes {stable_mosaic.version = 11 : i64} {
  func.func @_mha_kernel(%arg0: i32, %arg1: memref<8x8xf32, #tpu.memory_space<vmem>>, %arg2: memref<1x8x32xbf16, #tpu.memory_space<vmem>>, %arg3: memref<1x8x32xbf16, #tpu.memory_space<vmem>>, %arg4: memref<1x8x32xbf16, #tpu.memory_space<vmem>>, %arg5: memref<32x32xbf16, #tpu.memory_space<vmem>>, %arg6: memref<1x32xf32, #tpu.memory_space<vmem>>, %arg7: memref<32x32xbf16, #tpu.memory_space<vmem>>, %arg8: memref<1x32xf32, #tpu.memory_space<vmem>>, %arg9: memref<32x32xbf16, #tpu.memory_space<vmem>>, %arg10: memref<1x32xf32, #tpu.memory_space<vmem>>, %arg11: memref<32x32xbf16, #tpu.memory_space<vmem>>, %arg12: memref<1x32xf32, #tpu.memory_space<vmem>>, %arg13: memref<1x8x32xf32, #tpu.memory_space<vmem>>) attributes {dimension_semantics = [#tpu.dimension_semantics<parallel>], iteration_bounds = array<i64: 2>, scalar_prefetch = 0 : i64, scratch_operands = 0 : i64, tpu.core_type = #tpu.core_type<tc>, window_params = [{pipeline_mode = #tpu.pipeline_mode<synchronous>, transform_indices = @transform_0, window_bounds = array<i64: 8, 8>}, {transform_indices = @transform_1, window_bounds = array<i64: 1, 8, 32>}, {transform_indices = @transform_2, window_bounds = array<i64: 1, 8, 32>}, {transform_indices = @transform_3, window_bounds = array<i64: 1, 8, 32>}, {pipeline_mode = #tpu.pipeline_mode<synchronous>, transform_indices = @transform_4, window_bounds = array<i64: 32, 32>}, {pipeline_mode = #tpu.pipeline_mode<synchronous>, transform_indices = @transform_5, window_bounds = array<i64: 1, 32>}, {pipeline_mode = #tpu.pipeline_mode<synchronous>, transform_indices = @transform_6, window_bounds = array<i64: 32, 32>}, {pipeline_mode = #tpu.pipeline_mode<synchronous>, transform_indices = @transform_7, window_bounds = array<i64: 1, 32>}, {pipeline_mode = #tpu.pipeline_mode<synchronous>, transform_indices = @transform_8, window_bounds = array<i64: 32, 32>}, {pipeline_mode = #tpu.pipeline_mode<synchronous>, transform_indices = @transform_9, window_bounds = array<i64: 1, 32>}, {pipeline_mode = #tpu.pipeline_mode<synchronous>, transform_indices = @transform_10, window_bounds = array<i64: 32, 32>}, {pipeline_mode = #tpu.pipeline_mode<synchronous>, transform_indices = @transform_11, window_bounds = array<i64: 1, 32>}, {transform_indices = @transform_12, window_bounds = array<i64: 1, 8, 32>}]} {
    %c0 = arith.constant 0 : index
    %c0_0 = arith.constant 0 : index
    %c0_1 = arith.constant 0 : index
    %0 = vector.load %arg2[%c0, %c0_0, %c0_1] : memref<1x8x32xbf16, #tpu.memory_space<vmem>>, vector<1x8x32xbf16>
    %1 = vector.shape_cast %0 : vector<1x8x32xbf16> to vector<8x32xbf16>
    %c0_2 = arith.constant 0 : index
    %c0_3 = arith.constant 0 : index
    %c0_4 = arith.constant 0 : index
    %2 = vector.load %arg3[%c0_2, %c0_3, %c0_4] : memref<1x8x32xbf16, #tpu.memory_space<vmem>>, vector<1x8x32xbf16>
    %3 = vector.shape_cast %2 : vector<1x8x32xbf16> to vector<8x32xbf16>
    %c0_5 = arith.constant 0 : index
    %c0_6 = arith.constant 0 : index
    %c0_7 = arith.constant 0 : index
    %4 = vector.load %arg4[%c0_5, %c0_6, %c0_7] : memref<1x8x32xbf16, #tpu.memory_space<vmem>>, vector<1x8x32xbf16>
    %5 = vector.shape_cast %4 : vector<1x8x32xbf16> to vector<8x32xbf16>
    %c0_8 = arith.constant 0 : index
    %c0_9 = arith.constant 0 : index
    %6 = vector.load %arg5[%c0_8, %c0_9] : memref<32x32xbf16, #tpu.memory_space<vmem>>, vector<32x32xbf16>
    %cst = arith.constant dense<0.000000e+00> : vector<8x32xf32>
    %7 = tpu.matmul %1, %6, %cst {dimension_numbers = #tpu.dot_dimension_numbers<[1], [0], [0], [1], [0, 0, 1, 1], [], []>} : vector<8x32xbf16>, vector<32x32xbf16>, vector<8x32xf32> -> vector<8x32xf32>
    %c0_10 = arith.constant 0 : index
    %c0_11 = arith.constant 0 : index
    %8 = vector.load %arg6[%c0_10, %c0_11] : memref<1x32xf32, #tpu.memory_space<vmem>>, vector<1x32xf32>
    %9 = vector.broadcast %8 : vector<1x32xf32> to vector<8x32xf32>
    %10 = arith.addf %7, %9 : vector<8x32xf32>
    %11 = arith.truncf %10 : vector<8x32xf32> to vector<8x32xbf16>
    %c0_12 = arith.constant 0 : index
    %c0_13 = arith.constant 0 : index
    %12 = vector.load %arg7[%c0_12, %c0_13] : memref<32x32xbf16, #tpu.memory_space<vmem>>, vector<32x32xbf16>
    %cst_14 = arith.constant dense<0.000000e+00> : vector<8x32xf32>
    %13 = tpu.matmul %3, %12, %cst_14 {dimension_numbers = #tpu.dot_dimension_numbers<[1], [0], [0], [1], [0, 0, 1, 1], [], []>} : vector<8x32xbf16>, vector<32x32xbf16>, vector<8x32xf32> -> vector<8x32xf32>
    %c0_15 = arith.constant 0 : index
    %c0_16 = arith.constant 0 : index
    %14 = vector.load %arg8[%c0_15, %c0_16] : memref<1x32xf32, #tpu.memory_space<vmem>>, vector<1x32xf32>
    %15 = vector.broadcast %14 : vector<1x32xf32> to vector<8x32xf32>
    %16 = arith.addf %13, %15 : vector<8x32xf32>
    %17 = arith.truncf %16 : vector<8x32xf32> to vector<8x32xbf16>
    %c0_17 = arith.constant 0 : index
    %c0_18 = arith.constant 0 : index
    %18 = vector.load %arg9[%c0_17, %c0_18] : memref<32x32xbf16, #tpu.memory_space<vmem>>, vector<32x32xbf16>
    %cst_19 = arith.constant dense<0.000000e+00> : vector<8x32xf32>
    %19 = tpu.matmul %5, %18, %cst_19 {dimension_numbers = #tpu.dot_dimension_numbers<[1], [0], [0], [1], [0, 0, 1, 1], [], []>} : vector<8x32xbf16>, vector<32x32xbf16>, vector<8x32xf32> -> vector<8x32xf32>
    %c0_20 = arith.constant 0 : index
    %c0_21 = arith.constant 0 : index
    %20 = vector.load %arg10[%c0_20, %c0_21] : memref<1x32xf32, #tpu.memory_space<vmem>>, vector<1x32xf32>
    %21 = vector.broadcast %20 : vector<1x32xf32> to vector<8x32xf32>
    %22 = arith.addf %19, %21 : vector<8x32xf32>
    %23 = arith.truncf %22 : vector<8x32xf32> to vector<8x32xbf16>
    %24 = vector.extract_strided_slice %11 {offsets = [0, 0], sizes = [8, 16], strides = [1, 1]} : vector<8x32xbf16> to vector<8x16xbf16>
    %25 = vector.shape_cast %24 : vector<8x16xbf16> to vector<1x8x16xbf16>
    %26 = vector.extract_strided_slice %11 {offsets = [0, 16], sizes = [8, 16], strides = [1, 1]} : vector<8x32xbf16> to vector<8x16xbf16>
    %27 = vector.shape_cast %26 : vector<8x16xbf16> to vector<1x8x16xbf16>
    %28 = vector.shape_cast %25 : vector<1x8x16xbf16> to vector<1x1x8x16xbf16>
    %29 = vector.shape_cast %27 : vector<1x8x16xbf16> to vector<1x1x8x16xbf16>
    %30 = tpu.concatenate %28, %29 in 0 : vector<1x1x8x16xbf16>, vector<1x1x8x16xbf16> -> vector<2x1x8x16xbf16>
    %31 = vector.shape_cast %30 : vector<2x1x8x16xbf16> to vector<2x8x16xbf16>
    %32 = vector.extract_strided_slice %17 {offsets = [0, 0], sizes = [8, 16], strides = [1, 1]} : vector<8x32xbf16> to vector<8x16xbf16>
    %33 = vector.shape_cast %32 : vector<8x16xbf16> to vector<1x8x16xbf16>
    %34 = vector.extract_strided_slice %17 {offsets = [0, 16], sizes = [8, 16], strides = [1, 1]} : vector<8x32xbf16> to vector<8x16xbf16>
    %35 = vector.shape_cast %34 : vector<8x16xbf16> to vector<1x8x16xbf16>
    %36 = vector.shape_cast %33 : vector<1x8x16xbf16> to vector<1x1x8x16xbf16>
    %37 = vector.shape_cast %35 : vector<1x8x16xbf16> to vector<1x1x8x16xbf16>
    %38 = tpu.concatenate %36, %37 in 0 : vector<1x1x8x16xbf16>, vector<1x1x8x16xbf16> -> vector<2x1x8x16xbf16>
    %39 = vector.shape_cast %38 : vector<2x1x8x16xbf16> to vector<2x8x16xbf16>
    %40 = vector.extract_strided_slice %23 {offsets = [0, 0], sizes = [8, 16], strides = [1, 1]} : vector<8x32xbf16> to vector<8x16xbf16>
    %41 = vector.shape_cast %40 : vector<8x16xbf16> to vector<1x8x16xbf16>
    %42 = vector.extract_strided_slice %23 {offsets = [0, 16], sizes = [8, 16], strides = [1, 1]} : vector<8x32xbf16> to vector<8x16xbf16>
    %43 = vector.shape_cast %42 : vector<8x16xbf16> to vector<1x8x16xbf16>
    %44 = vector.shape_cast %41 : vector<1x8x16xbf16> to vector<1x1x8x16xbf16>
    %45 = vector.shape_cast %43 : vector<1x8x16xbf16> to vector<1x1x8x16xbf16>
    %46 = tpu.concatenate %44, %45 in 0 : vector<1x1x8x16xbf16>, vector<1x1x8x16xbf16> -> vector<2x1x8x16xbf16>
    %47 = vector.shape_cast %46 : vector<2x1x8x16xbf16> to vector<2x8x16xbf16>
    "tpu.trace_start"() <{level = 10 : i32, message = "bqd,bkd->bqk"}> : () -> ()
    %cst_22 = arith.constant dense<0.000000e+00> : vector<2x8x8xf32>
    %48 = tpu.matmul %31, %39, %cst_22 {dimension_numbers = #tpu.dot_dimension_numbers<[2], [2], [1], [1], [0, 0, 0, 1, 1, 1], [0], [0]>} : vector<2x8x16xbf16>, vector<2x8x16xbf16>, vector<2x8x8xf32> -> vector<2x8x8xf32>
    "tpu.trace_stop"() : () -> ()
    %c0_23 = arith.constant 0 : index
    %c0_24 = arith.constant 0 : index
    %49 = vector.load %arg1[%c0_23, %c0_24] : memref<8x8xf32, #tpu.memory_space<vmem>>, vector<8x8xf32>
    %50 = vector.shape_cast %49 : vector<8x8xf32> to vector<1x8x8xf32>
    %51 = vector.broadcast %50 : vector<1x8x8xf32> to vector<2x8x8xf32>
    %52 = arith.addf %48, %51 : vector<2x8x8xf32>
    %cst_25 = arith.constant dense<0xFF800000> : vector<2x8xf32>
    %53 = vector.multi_reduction <maximumf>, %52, %cst_25 [2] : vector<2x8x8xf32> to vector<2x8xf32>
    %54 = vector.shape_cast %53 : vector<2x8xf32> to vector<2x8x1xf32>
    %55 = vector.broadcast %54 : vector<2x8x1xf32> to vector<2x8x8xf32>
    %56 = arith.subf %52, %55 : vector<2x8x8xf32>
    %57 = math.exp %56 : vector<2x8x8xf32>
    %cst_26 = arith.constant dense<0.000000e+00> : vector<2x8xf32>
    %58 = vector.multi_reduction <add>, %57, %cst_26 [2] : vector<2x8x8xf32> to vector<2x8xf32>
    %59 = vector.shape_cast %58 : vector<2x8xf32> to vector<2x8x1xf32>
    %60 = arith.truncf %57 : vector<2x8x8xf32> to vector<2x8x8xbf16>
    "tpu.trace_start"() <{level = 10 : i32, message = "bqk,bkd->bqd"}> : () -> ()
    %cst_27 = arith.constant dense<0.000000e+00> : vector<2x8x16xf32>
    %61 = tpu.matmul %60, %47, %cst_27 {dimension_numbers = #tpu.dot_dimension_numbers<[2], [1], [1], [2], [0, 0, 0, 1, 1, 2], [0], [0]>} : vector<2x8x8xbf16>, vector<2x8x16xbf16>, vector<2x8x16xf32> -> vector<2x8x16xf32>
    "tpu.trace_stop"() : () -> ()
    %62 = tpu.reciprocal %59 {approx = true} : vector<2x8x1xf32> -> vector<2x8x1xf32>
    %63 = vector.broadcast %62 : vector<2x8x1xf32> to vector<2x8x16xf32>
    %64 = arith.mulf %61, %63 : vector<2x8x16xf32>
    %65 = vector.shape_cast %64 : vector<2x8x16xf32> to vector<2x1x8x16xf32>
    %66 = vector.extract_strided_slice %65 {offsets = [0, 0, 0, 0], sizes = [1, 1, 8, 16], strides = [1, 1, 1, 1]} : vector<2x1x8x16xf32> to vector<1x1x8x16xf32>
    %67 = vector.shape_cast %66 : vector<1x1x8x16xf32> to vector<1x8x16xf32>
    %68 = vector.extract_strided_slice %65 {offsets = [1, 0, 0, 0], sizes = [1, 1, 8, 16], strides = [1, 1, 1, 1]} : vector<2x1x8x16xf32> to vector<1x1x8x16xf32>
    %69 = vector.shape_cast %68 : vector<1x1x8x16xf32> to vector<1x8x16xf32>
    %70 = tpu.concatenate %67, %69 in 2 : vector<1x8x16xf32>, vector<1x8x16xf32> -> vector<1x8x32xf32>
    %71 = vector.shape_cast %70 : vector<1x8x32xf32> to vector<8x32xf32>
    %72 = arith.truncf %71 : vector<8x32xf32> to vector<8x32xbf16>
    %c0_28 = arith.constant 0 : index
    %c0_29 = arith.constant 0 : index
    %73 = vector.load %arg11[%c0_28, %c0_29] : memref<32x32xbf16, #tpu.memory_space<vmem>>, vector<32x32xbf16>
    %cst_30 = arith.constant dense<0.000000e+00> : vector<8x32xf32>
    %74 = tpu.matmul %72, %73, %cst_30 {dimension_numbers = #tpu.dot_dimension_numbers<[1], [0], [0], [1], [0, 0, 1, 1], [], []>} : vector<8x32xbf16>, vector<32x32xbf16>, vector<8x32xf32> -> vector<8x32xf32>
    %c0_31 = arith.constant 0 : index
    %c0_32 = arith.constant 0 : index
    %75 = vector.load %arg12[%c0_31, %c0_32] : memref<1x32xf32, #tpu.memory_space<vmem>>, vector<1x32xf32>
    %76 = vector.broadcast %75 : vector<1x32xf32> to vector<8x32xf32>
    %77 = arith.addf %74, %76 : vector<8x32xf32>
    %78 = vector.shape_cast %77 : vector<8x32xf32> to vector<1x8x32xf32>
    %c0_33 = arith.constant 0 : index
    %c0_34 = arith.constant 0 : index
    %c0_35 = arith.constant 0 : index
    %79 = vector.load %arg13[%c0_33, %c0_34, %c0_35] : memref<1x8x32xf32, #tpu.memory_space<vmem>>, vector<1x8x32xf32>
    tpu.vector_store %arg13[%c0_33, %c0_34, %c0_35], %78 {strides = array<i32>} : memref<1x8x32xf32, #tpu.memory_space<vmem>>, vector<1x8x32xf32>,
    return
  }
  func.func @transform_0(%arg0: i32) -> (i32, i32) {
    %c0_i32 = arith.constant 0 : i32
    %c0_i32_0 = arith.constant 0 : i32
    %c0_i32_1 = arith.constant 0 : i32
    return %c0_i32, %c0_i32_0 : i32, i32
  }
  func.func @transform_1(%arg0: i32) -> (i32, i32, i32) {
    %c0_i32 = arith.constant 0 : i32
    %c0_i32_0 = arith.constant 0 : i32
    %c0_i32_1 = arith.constant 0 : i32
    return %arg0, %c0_i32, %c0_i32_0 : i32, i32, i32
  }
  func.func @transform_2(%arg0: i32) -> (i32, i32, i32) {
    %c0_i32 = arith.constant 0 : i32
    %c0_i32_0 = arith.constant 0 : i32
    %c0_i32_1 = arith.constant 0 : i32
    return %arg0, %c0_i32, %c0_i32_0 : i32, i32, i32
  }
  func.func @transform_3(%arg0: i32) -> (i32, i32, i32) {
    %c0_i32 = arith.constant 0 : i32
    %c0_i32_0 = arith.constant 0 : i32
    %c0_i32_1 = arith.constant 0 : i32
    return %arg0, %c0_i32, %c0_i32_0 : i32, i32, i32
  }
  func.func @transform_4(%arg0: i32) -> (i32, i32) {
    %c0_i32 = arith.constant 0 : i32
    %c0_i32_0 = arith.constant 0 : i32
    %c0_i32_1 = arith.constant 0 : i32
    return %c0_i32, %c0_i32_0 : i32, i32
  }
  func.func @transform_5(%arg0: i32) -> (i32, i32) {
    %c0_i32 = arith.constant 0 : i32
    %c0_i32_0 = arith.constant 0 : i32
    %c0_i32_1 = arith.constant 0 : i32
    return %c0_i32, %c0_i32_0 : i32, i32
  }
  func.func @transform_6(%arg0: i32) -> (i32, i32) {
    %c0_i32 = arith.constant 0 : i32
    %c0_i32_0 = arith.constant 0 : i32
    %c0_i32_1 = arith.constant 0 : i32
    return %c0_i32, %c0_i32_0 : i32, i32
  }
  func.func @transform_7(%arg0: i32) -> (i32, i32) {
    %c0_i32 = arith.constant 0 : i32
    %c0_i32_0 = arith.constant 0 : i32
    %c0_i32_1 = arith.constant 0 : i32
    return %c0_i32, %c0_i32_0 : i32, i32
  }
  func.func @transform_8(%arg0: i32) -> (i32, i32) {
    %c0_i32 = arith.constant 0 : i32
    %c0_i32_0 = arith.constant 0 : i32
    %c0_i32_1 = arith.constant 0 : i32
    return %c0_i32, %c0_i32_0 : i32, i32
  }
  func.func @transform_9(%arg0: i32) -> (i32, i32) {
    %c0_i32 = arith.constant 0 : i32
    %c0_i32_0 = arith.constant 0 : i32
    %c0_i32_1 = arith.constant 0 : i32
    return %c0_i32, %c0_i32_0 : i32, i32
  }
  func.func @transform_10(%arg0: i32) -> (i32, i32) {
    %c0_i32 = arith.constant 0 : i32
    %c0_i32_0 = arith.constant 0 : i32
    %c0_i32_1 = arith.constant 0 : i32
    return %c0_i32, %c0_i32_0 : i32, i32
  }
  func.func @transform_11(%arg0: i32) -> (i32, i32) {
    %c0_i32 = arith.constant 0 : i32
    %c0_i32_0 = arith.constant 0 : i32
    %c0_i32_1 = arith.constant 0 : i32
    return %c0_i32, %c0_i32_0 : i32, i32
  }
  func.func @transform_12(%arg0: i32) -> (i32, i32, i32) {
    %c0_i32 = arith.constant 0 : i32
    %c0_i32_0 = arith.constant 0 : i32
    %c0_i32_1 = arith.constant 0 : i32
    return %arg0, %c0_i32, %c0_i32_0 : i32, i32, i32
  }
}

</mosaic_0001>

<bundles_post_ra>
// kernel: tpu_custom_call.1
= control target key start
LH: loop header
LB: loop body
LE: loop exit
PB: predicated region body
PF: predicated region fallthrough
CT: control target
= control target key end

     0   :  { %s2253_s0 = inlined_call_operand.hbm [shape: f32[8,8], index: 0, kind: input, shape index: {}]   ;;  %s2254_s1 = inlined_call_operand.hbm [shape: bf16[2,8,32], index: 1, kind: input, shape index: {}]   ;;  %s2255_s2 = inlined_call_operand.hbm [shape: bf16[2,8,32], index: 2, kind: input, shape index: {}]   ;;  %s2256_s3 = inlined_call_operand.hbm [shape: bf16[2,8,32], index: 3, kind: input, shape index: {}]   ;;  %s2257_s4 = inlined_call_operand.hbm [shape: bf16[32,32], index: 4, kind: input, shape index: {}]   ;;  %s2258_s5 = inlined_call_operand.vmem [shape: f32[1,32], index: 5, kind: input, shape index: {}]   ;;  %s2259_s6 = inlined_call_operand.vmem [shape: bf16[32,32], index: 6, kind: input, shape index: {}]   ;;  %s2260_s7 = inlined_call_operand.vmem [shape: f32[1,32], index: 7, kind: input, shape index: {}]   ;;  %s2261_s8 = inlined_call_operand.hbm [shape: bf16[32,32], index: 8, kind: input, shape index: {}]   ;;  %s2262_s9 = inlined_call_operand.hbm [shape: f32[1,32], index: 9, kind: input, shape index: {}]   ;;  %s2263_s10 = inlined_call_operand.vmem [shape: bf16[32,32], index: 10, kind: input, shape index: {}]   ;;  %s2264_s11 = inlined_call_operand.vmem [shape: f32[1,32], index: 11, kind: input, shape index: {}]   ;;  %s2265_s12 = inlined_call_operand.hbm [shape: f32[2,8,32], index: 12, kind: output, shape index: {}]  }
   0x1   :  { %2287 = sst [smem:[#allocation27_spill]] %s2254_s1 }
   0x2   :  { %2288 = sst [smem:[#allocation28_spill]] %s2257_s4 }
   0x3   :  { %2289 = sst [smem:[#allocation29_spill]] %s2258_s5 }
   0x4   :  { %2290 = sst [smem:[#allocation30_spill]] %s2261_s8 }
   0x5   :  { %2291 = sst [smem:[#allocation31_spill]] %s2263_s10 }
   0x6   :  { %2292 = sst [smem:[#allocation32_spill]] %s2264_s11 }
   0x7   :  { %2293 = sst [smem:[#allocation33_spill]] %s2265_s12 }
   0x8   :  { %17 = vsyncpa [#allocation3], 0 }
   0x9   :  { %18 = vsyncpa [#allocation6], 0 }
   0xa   :  { %20 = vsyncpa [#allocation6 + $0x1], 0 }
   0xb   :  { %21 = vsyncpa [#allocation9], 0 }
   0xc   :  { %23 = vsyncpa [#allocation9 + $0x1], 0 }
   0xd   :  { %24 = vsyncpa [#allocation12], 0 }
   0xe   :  { %25 = vsyncpa [#allocation4], 0 }
   0xf   :  { %27 = vsyncpa [#allocation4 + $0x1], 0  ;;  %s1827_s21 = smov 0   ;;  %s1829_s22 = smov 0  }
  0x10   :  { %s1831_s23 = smov 0   ;;  %s1833_s24 = smov 0  }
  0x11 LB: > { %2294 = sst [smem:[#allocation21_spill]] %s1734_s21  ;;  %s1748_s25 = smov [#allocation10]   ;;  %s1746_s24 = sphi %s1833_s24, %s2337_s24   ;;  %s1742_s23 = sphi %s1831_s23, %s2339_s23   ;;  %s1738_s22 = sphi %s1829_s22, %s2341_s22   ;;  %s1734_s21 = sphi %s1827_s21, %s2340_s21  }
  0x12   : > { %2295 = sst [smem:[#allocation22_spill]] %s1742_s23  ;;  %s354_s26 = sshll.u32 %s1748_s25, 4  ;;  %s1853_s26 = int_to_ptr.vmem [resolvable:$true] %s354_s26 }
  0x13   : > { %s1848_s27 = sadd.s32 4294967295, %s1746_s24   ;;  %p1222_p0 = scmp.ge.s32.totalorder %s1746_s24, 1 }
  0x14   : > { %p2272_p1 = scmp.eq.s32.totalorder %s1848_s27, 0  ;;  %p331_p2 = scmp.lt.s32.totalorder %s1746_s24, 3 }
  0x15   : > { %s1749_s29 = smov [#allocation11]   ;;  %s2298_s4 = sld [smem:[#allocation28_spill]] }
  0x16   : > { %p1855_p3 = pnand %p1222_p0, %p331_p2  ;;  %s376_s30 = sshll.u32 %s1749_s29, 4  ;;  %s1868_s30 = int_to_ptr.vmem [resolvable:$true] %s376_s30 }
  0x18   : > { %s2296_s28 = scalar_select %p1855_p3, 1, 0 }
  0x19   : > { %p1367_p5 = pneg %p1855_p3 }
  0x1b   : > { %p1864_p6 = pnand %p1367_p5, %p2272_p1  ;;  %s1462_s16 = scalar_lea.hbm %s2298_s4, 256 }
  0x1c   : > { %p1463_p7 = scmp.ne.s32.totalorder %s2298_s4, %s1462_s16  ;;  %p1469_p11 = scmp.lt.u32.totalorder %s1462_s16, %s2298_s4 }
  0x1d   : > { %s2297_s13 = scalar_select %p1864_p6, 1, 0 }
  0x1e   : > { %p1878_p8 = pneg %p1864_p6 }
  0x20   : > { %s2299_s19 = scalar_select %p1878_p8, 1, 0 }
  0x21   : > { %p1465_p9 = pnand %p1878_p8, %p1463_p7 }
  0x23   : > { %p1466_p10 = pneg %p1465_p9 }
  0x25   : > { %p1471_p12 = pnand %p1469_p11, %p1466_p10 }
  0x27   : > { %1474 = shalt.err (!%p1471_p12)
}
  0x28   : > { %s1475_s29 = scalar_lea.vmem %s1853_s26, 256  ;;  %p1483_p5 = scmp.lt.s32.totalorder %s1853_s26, %s1853_s26 }
  0x29   : > { %p1476_p13 = scmp.ne.s32.totalorder %s1853_s26, %s1475_s29  ;;  %p1484_p4 = scmp.lt.s32.totalorder %s1475_s29, %s1475_s29 }
  0x2b   : > { %p1478_p0 = pnand %p1476_p13, %p1878_p8  ;;  %p1485_p7 = por %p1484_p4, %p1483_p5 }
  0x2d   : > { %p1479_p2 = pneg %p1478_p0 }
  0x2f   : > { %p1486_p9 = pnand %p1485_p7, %p1479_p2 }
  0x31   : > { %1489 = shalt.err (!%p1486_p9)
}
  0x32   : > { %s1750_s14 = smov 64   ;;  %s1751_s15 = smov 4  }
  0x33   : > { %1373 = dma.hbm_to_vmem [thread:$0]  (!%p1864_p6), %s2298_s4, 256, %s1853_s26, [#allocation9], %s1750_s14, %s1750_s14, %s1751_s15  }
  0x34   : > { %s2300_s8 = sld [smem:[#allocation30_spill]] }
  0x3a   : > { %s1490_s25 = scalar_lea.hbm %s2300_s8, 256 }
  0x3b   : > { %p1491_p4 = scmp.ne.s32.totalorder %s2300_s8, %s1490_s25  ;;  %p1497_p12 = scmp.lt.u32.totalorder %s1490_s25, %s2300_s8 }
  0x3d   : > { %p1493_p10 = pnand %p1491_p4, %p1878_p8 }
  0x3f   : > { %p1494_p11 = pneg %p1493_p10 }
  0x41   : > { %p1499_p13 = pnand %p1497_p12, %p1494_p11 }
  0x43   : > { %1502 = shalt.err (!%p1499_p13)
}
  0x44   : > { %s1503_s26 = scalar_lea.vmem %s1868_s30, 256  ;;  %p1511_p7 = scmp.lt.s32.totalorder %s1868_s30, %s1868_s30 }
  0x45   : > { %p1504_p0 = scmp.ne.s32.totalorder %s1868_s30, %s1503_s26  ;;  %p1512_p9 = scmp.lt.s32.totalorder %s1503_s26, %s1503_s26 }
  0x47   : > { %p1506_p2 = pnand %p1504_p0, %p1878_p8  ;;  %p1513_p4 = por %p1512_p9, %p1511_p7 }
  0x49   : > { %p1507_p5 = pneg %p1506_p2 }
  0x4b   : > { %p1514_p10 = pnand %p1513_p4, %p1507_p5 }
  0x4d   : > { %1517 = shalt.err (!%p1514_p10)
}
  0x4e   : > { %1376 = dma.hbm_to_vmem [thread:$0]  (!%p1864_p6), %s2300_s8, 256, %s1868_s30, [#allocation12], %s1750_s14, %s1750_s14, %s1751_s15  }
  0x4f   : > { %s1221_s12 = sadd.s32 4294967294, %s1746_s24   ;;  %s1924_s16 = sadd.s32 1, %s1746_s24  }
  0x50   : > { %2301 = sst [smem:[#allocation23_spill]] %s1924_s16  ;;  %s58_s17 = ssub.s32 %s1746_s24, %s1924_s16 }
  0x51   : > { %s61_s18 = sadd.s32 1, %s1742_s23  ;;  %p59_p11 = scmp.eq.s32.totalorder %s58_s17, 0 }
  0x52   : > { %p68_p12 = scmp.ne.s32.totalorder %s1742_s23, %s1738_s22  ;;  %p69_p13 = scmp.eq.s32.totalorder %s1746_s24, 0 }
  0x53   : > { %p74_p0 = scmp.ne.s32.totalorder %s1738_s22, %s1734_s21  ;;  %p318_p7 = scmp.eq.s32.totalorder %s1848_s27, 1 }
  0x54   : > { %s1935_s20 = scalar_select %p59_p11, %s1742_s23, %s61_s18  }
  0x55   : > { %p1937_p2 = por %p69_p13, %p68_p12  ;;  %p1943_p5 = por %p2272_p1, %p74_p0 }
  0x56   : > { %2302 = sst [smem:[#allocation24_spill]] %s1935_s20  ;;  %p324_p9 = scmp.eq.s32.totalorder %s1221_s12, 1 }
  0x57   : > { %s2304_s30 = scalar_select %p1943_p5, 1, 0 }
  0x58   : > { %p1398_p4 = scmp.lt.s32.totalorder %s1746_s24, 2  ;;  %p1950_p10 = por %p318_p7, %p68_p12 }
  0x59   : > { %p1954_p11 = por %p324_p9, %p74_p0  ;;  %s409_s26 = sand.u32 1, %s1742_s23  }
  0x5a   : > { %s2305_s15 = scalar_select %p1950_p10, 1, 0 }
  0x5b   : > { %s2307_s29 = scalar_select %p1954_p11, 1, 0 }
  0x5c   : > { %2306 = sst [smem:[#allocation25_spill]] %s2305_s15  ;;  %s1959_s10 = sshll.u32 %s409_s26, 2 }
  0x5d   : > { %2308 = sst [smem:[#allocation26_spill]] %s2307_s29  ;;  %s1962_s11 = sshll.u32 %s1746_s24, 6 }
  0x5e   : > { %s2309_s1 = sld [smem:[#allocation27_spill]]  ;;  %s411_s14 = scalar_lea.vmem [#allocation5], %s1959_s10 }
  0x5f   : > { %s418_s4 = sshll.u32 %s411_s14, 4  ;;  %p1973_p12 = pnand %p1398_p4, %p1937_p2  ;;  %s1977_s4 = int_to_ptr.vmem [resolvable:$true] %s418_s4 }
  0x60   : > { %s2311_s26 = sand.u32 1, %s1746_s24  }
  0x61   : > { %s2310_s8 = scalar_select %p1973_p12, 1, 0 }
  0x62   : > { %s1981_s20 = scalar_lea.sflag [#allocation6], %s2311_s26  ;;  %p1987_p0 = pneg %p1973_p12 }
  0x64   : > { %s1968_s12 = scalar_lea.hbm %s2309_s1, %s1962_s11  ;;  %s1523_s23 = scalar_lea.hbm %s2309_s1, 128 }
  0x65   : > { %s1518_s17 = scalar_lea.hbm %s1968_s12, 64  ;;  %p1524_p9 = scmp.lt.u32.totalorder %s1968_s12, %s2309_s1 }
  0x66   : > { %p1519_p13 = scmp.ne.s32.totalorder %s1968_s12, %s1518_s17  ;;  %p1525_p4 = scmp.lt.u32.totalorder %s1523_s23, %s1518_s17 }
  0x67   : > { %s2312_s18 = scalar_select %p1987_p0, 1, 0 }
  0x68   : > { %p1521_p7 = pnand %p1987_p0, %p1519_p13  ;;  %p1526_p1 = por %p1525_p4, %p1524_p9 }
  0x69   : > { %p1527_p11 = scmp.lt.u32.totalorder %s1518_s17, %s1968_s12 }
  0x6a   : > { %p1522_p2 = pneg %p1521_p7 }
  0x6b   : > { %p1528_p10 = por %p1527_p11, %p1526_p1 }
  0x6d   : > { %p1529_p5 = pnand %p1528_p10, %p1522_p2 }
  0x6f   : > { %1532 = shalt.err (!%p1529_p5)
}
  0x70   : > { %s1533_s26 = scalar_lea.vmem %s1977_s4, 64  ;;  %s1752_s25 = smov [#allocation5]  }
  0x71   : > { %p1534_p13 = scmp.ne.s32.totalorder %s1977_s4, %s1533_s26  ;;  %s1538_s14 = sshll.u32 %s1752_s25, 4  ;;  %s1539_s14 = int_to_ptr.vmem [resolvable:$false] %s1538_s14 }
  0x72   : > { %s1540_s16 = scalar_lea.vmem %s1539_s14, 128  ;;  %p1541_p6 = scmp.lt.s32.totalorder %s1977_s4, %s1539_s14 }
  0x73   : > { %p1536_p7 = pnand %p1534_p13, %p1987_p0  ;;  %p1542_p8 = scmp.lt.s32.totalorder %s1540_s16, %s1533_s26 }
  0x75   : > { %p1537_p3 = pneg %p1536_p7  ;;  %p1543_p9 = por %p1542_p8, %p1541_p6 }
  0x77   : > { %p1544_p4 = pnand %p1543_p9, %p1537_p3 }
  0x79   : > { %1547 = shalt.err (!%p1544_p4)
}
  0x7a   : > { %1383 = dma.hbm_to_vmem [thread:$0]  (!%p1973_p12), %s1968_s12, 64, %s1977_s4, %s1981_s20  }
  0x7b   : > { %s1753_s23 = smov [#allocation2]   ;;  %s1754_s17 = smov [#allocation13]  }
  0x7c   : > { %s344_s29 = sshll.u32 %s1753_s23, 4  ;;  %s390_s1 = sshll.u32 %s1754_s17, 4  ;;  %s345_s29 = int_to_ptr.vmem [resolvable:$true] %s344_s29  ;;  %s391_s1 = int_to_ptr.vmem [resolvable:$true] %s390_s1 }
  0x7d   : > { %s1548_s14 = scalar_lea.hbm %s2253_s0, 128  ;;  %p2313_p3 = scmp.ne.s32.totalorder %s2299_s19, 0 }
  0x7e   : > { %p1549_p1 = scmp.ne.s32.totalorder %s2253_s0, %s1548_s14  ;;  %p1555_p5 = scmp.lt.u32.totalorder %s1548_s14, %s2253_s0 }
  0x80   : > { %p1551_p6 = pnand %p1549_p1, %p2313_p3 }
  0x82   : > { %p1552_p8 = pneg %p1551_p6 }
  0x84   : > { %p1557_p10 = pnand %p1555_p5, %p1552_p8 }
  0x86   : > { %1560 = shalt.err (!%p1557_p10)
}
  0x87   : > { %s1561_s4 = scalar_lea.vmem %s345_s29, 128  ;;  %p1569_p7 = scmp.lt.s32.totalorder %s345_s29, %s345_s29 }
  0x88   : > { %p1562_p11 = scmp.ne.s32.totalorder %s345_s29, %s1561_s4  ;;  %p1570_p9 = scmp.lt.s32.totalorder %s1561_s4, %s1561_s4 }
  0x8a   : > { %p1564_p2 = pnand %p1562_p11, %p2313_p3  ;;  %p1571_p4 = por %p1570_p9, %p1569_p7 }
  0x8c   : > { %p1565_p13 = pneg %p1564_p2 }
  0x8e   : > { %p1572_p12 = pnand %p1571_p4, %p1565_p13 }
  0x90   : > { %1575 = shalt.err (!%p1572_p12)
}
  0x91   : > { %p2314_p1 = scmp.ne.s32.totalorder %s2297_s13, 0  ;;  %s1576_s23 = scalar_lea.hbm %s2262_s9, 16 }
  0x92   : > { %p1577_p6 = scmp.ne.s32.totalorder %s2262_s9, %s1576_s23  ;;  %p1583_p12 = scmp.lt.u32.totalorder %s1576_s23, %s2262_s9 }
  0x93   : > { %1370 = dma.hbm_to_vmem [thread:$0]  (!%p2314_p1), %s2253_s0, 128, %s345_s29, [#allocation3]  }
  0x94   : > { %p1579_p8 = pnand %p1577_p6, %p2313_p3 }
  0x96   : > { %p1580_p5 = pneg %p1579_p8 }
  0x98   : > { %p1585_p10 = pnand %p1583_p12, %p1580_p5 }
  0x9a   : > { %1588 = shalt.err (!%p1585_p10)
}
  0x9b   : > { %s1589_s16 = scalar_lea.vmem %s391_s1, 16  ;;  %s1596_s29 = scalar_lea.vmem %s391_s1, 32 }
  0x9c   : > { %p1590_p11 = scmp.ne.s32.totalorder %s391_s1, %s1589_s16  ;;  %p1597_p7 = scmp.lt.s32.totalorder %s391_s1, %s391_s1 }
  0x9d   : > { %p1598_p9 = scmp.lt.s32.totalorder %s1596_s29, %s1589_s16 }
  0x9e   : > { %p1592_p2 = pnand %p1590_p11, %p2313_p3 }
  0x9f   : > { %p1599_p4 = por %p1598_p9, %p1597_p7 }
  0xa0   : > { %p1593_p13 = pneg %p1592_p2 }
  0xa2   : > { %p1600_p0 = pnand %p1599_p4, %p1593_p13 }
  0xa4   : > { %1603 = shalt.err (!%p1600_p0)
}
  0xa5   : > { %1379 = dma.hbm_to_vmem [thread:$0]  (!%p2314_p1), %s2262_s9, 16, %s391_s1, [#allocation12]  }
  0xa6   : > { %s2051_s19 = scalar_lea.hbm %s2255_s2, %s1962_s11  ;;  %s429_s15 = scalar_lea.vmem [#allocation7], %s1959_s10 }
  0xa7   : > { %s436_s23 = sshll.u32 %s429_s15, 4  ;;  %s1604_s13 = scalar_lea.hbm %s2051_s19, 64  ;;  %s437_s23 = int_to_ptr.vmem [resolvable:$true] %s436_s23 }
  0xa8   : > { %p1605_p0 = scmp.ne.s32.totalorder %s2051_s19, %s1604_s13  ;;  %p2315_p3 = scmp.ne.s32.totalorder %s2312_s18, 0 }
  0xa9   : > { %s1609_s1 = scalar_lea.hbm %s2255_s2, 128  ;;  %p1610_p1 = scmp.lt.u32.totalorder %s2051_s19, %s2255_s2 }
  0xaa   : > { %p1607_p6 = pnand %p1605_p0, %p2315_p3  ;;  %p1611_p5 = scmp.lt.u32.totalorder %s1609_s1, %s1604_s13 }
  0xab   : > { %p1613_p10 = scmp.lt.u32.totalorder %s1604_s13, %s2051_s19 }
  0xac   : > { %p1608_p8 = pneg %p1607_p6  ;;  %p1612_p12 = por %p1611_p5, %p1610_p1 }
  0xae   : > { %p1614_p11 = por %p1613_p10, %p1612_p12 }
  0xb0   : > { %p1615_p2 = pnand %p1614_p11, %p1608_p8 }
  0xb2   : > { %1618 = shalt.err (!%p1615_p2)
}
  0xb3   : > { %s1619_s16 = scalar_lea.vmem %s437_s23, 64  ;;  %s1755_s29 = smov [#allocation7]  }
  0xb4   : > { %p1620_p13 = scmp.ne.s32.totalorder %s437_s23, %s1619_s16  ;;  %s1624_s4 = sshll.u32 %s1755_s29, 4  ;;  %s1625_s4 = int_to_ptr.vmem [resolvable:$false] %s1624_s4 }
  0xb5   : > { %s1626_s21 = scalar_lea.vmem %s1625_s4, 128  ;;  %p1627_p4 = scmp.lt.s32.totalorder %s437_s23, %s1625_s4 }
  0xb6   : > { %p1622_p7 = pnand %p1620_p13, %p2315_p3  ;;  %p1628_p0 = scmp.lt.s32.totalorder %s1626_s21, %s1619_s16 }
  0xb8   : > { %p1623_p9 = pneg %p1622_p7  ;;  %p1629_p6 = por %p1628_p0, %p1627_p4 }
  0xba   : > { %p1630_p1 = pnand %p1629_p6, %p1623_p9 }
  0xbc   : > { %1633 = shalt.err (!%p1630_p1)
}
  0xbd   : > { %p2316_p5 = scmp.ne.s32.totalorder %s2310_s8, 0  ;;  %s2076_s15 = scalar_lea.hbm %s2256_s3, %s1962_s11 }
  0xbe   : > { %s447_s13 = scalar_lea.vmem [#allocation8], %s1959_s10  ;;  %s2317_s25 = sand.u32 1, %s1746_s24  }
  0xbf   : > { %1386 = dma.hbm_to_vmem [thread:$0]  (!%p2316_p5), %s2051_s19, 64, %s437_s23, %s1981_s20  }
  0xc0   : > { %s454_s17 = sshll.u32 %s447_s13, 4  ;;  %s444_s1 = scalar_lea.sflag [#allocation9], %s2317_s25  ;;  %s455_s17 = int_to_ptr.vmem [resolvable:$true] %s454_s17 }
  0xc1   : > { %s1634_s14 = scalar_lea.hbm %s2076_s15, 64  ;;  %s1639_s23 = scalar_lea.hbm %s2256_s3, 128 }
  0xc2   : > { %p1635_p8 = scmp.ne.s32.totalorder %s2076_s15, %s1634_s14  ;;  %p1640_p11 = scmp.lt.u32.totalorder %s2076_s15, %s2256_s3 }
  0xc3   : > { %p1641_p2 = scmp.lt.u32.totalorder %s1639_s23, %s1634_s14  ;;  %p1643_p7 = scmp.lt.u32.totalorder %s1634_s14, %s2076_s15 }
  0xc4   : > { %p1637_p12 = pnand %p1635_p8, %p2315_p3 }
  0xc5   : > { %p1642_p13 = por %p1641_p2, %p1640_p11 }
  0xc6   : > { %p1638_p10 = pneg %p1637_p12 }
  0xc7   : > { %p1644_p9 = por %p1643_p7, %p1642_p13 }
  0xc9   : > { %p1645_p4 = pnand %p1644_p9, %p1638_p10 }
  0xcb   : > { %1648 = shalt.err (!%p1645_p4)
}
  0xcc   : > { %s1649_s10 = scalar_lea.vmem %s455_s17, 64  ;;  %s1756_s16 = smov [#allocation8]  }
  0xcd   : > { %p1650_p0 = scmp.ne.s32.totalorder %s455_s17, %s1649_s10  ;;  %s1654_s29 = sshll.u32 %s1756_s16, 4  ;;  %s1655_s29 = int_to_ptr.vmem [resolvable:$false] %s1654_s29 }
  0xce   : > { %s1656_s4 = scalar_lea.vmem %s1655_s29, 128  ;;  %p1657_p8 = scmp.lt.s32.totalorder %s455_s17, %s1655_s29 }
  0xcf   : > { %p1652_p6 = pnand %p1650_p0, %p2315_p3  ;;  %p1658_p12 = scmp.lt.s32.totalorder %s1656_s4, %s1649_s10 }
  0xd1   : > { %p1653_p1 = pneg %p1652_p6  ;;  %p1659_p5 = por %p1658_p12, %p1657_p8 }
  0xd3   : > { %p1660_p2 = pnand %p1659_p5, %p1653_p1 }
  0xd5   : > { %1663 = shalt.err (!%p1660_p2)
}
  0xd6   : > { %p2318_p11 = scmp.ne.s32.totalorder %s2310_s8, 0  ;;  %p2319_p10 = scmp.ne.s32.totalorder %s2296_s28, 0 }
  0xd7   : > { %p2320_p13 = scmp.eq.s32.totalorder (!%p2319_p10), %s1848_s27, 0 }
  0xd8   : > { %1389 = dma.hbm_to_vmem [thread:$0]  (!%p2318_p11), %s2076_s15, 64, %s455_s17, %s444_s1  }
  0xd9   : > { %463 = sbr.rel (%p2319_p10) target bundleno = 1522 (0x5f2), region = 68 }
  0xe0   : > { %1709 = dma.done.wait (%p2320_p13), [#allocation3], 128   ;;  %p2321_p3 = pmov %p2320_p13 }
  0xe1   : > { %s469_s18 = sand.u32 1, %s1848_s27   ;;  %s2106_s21 = sand.u32 1, %s1738_s22  }
  0xe2   : > { %1711 = vsyncadd (%p2321_p3), [#allocation3], 4294967168  ;;  %s2109_s12 = sshll.u32 %s2106_s21, 2  ;;  %s470_s8 = scalar_lea.sflag [#allocation6], %s469_s18 }
  0xe3   : > { %s473_s5 = scalar_lea.vmem [#allocation5], %s2109_s12  ;;  %p2322_p5 = scmp.ne.s32.totalorder %s2304_s30, 0 }
  0xe5   : > { %1713 = dma.done.wait (%p2322_p5), %s470_s8, 128  }
  0xe6   : > { %1715 = vsyncadd (%p2322_p5), %s470_s8, 4294967168  ;;  %s482_s28 = scalar_lea.vmem [#allocation7], %s2109_s12  ;;  %s488_s15 = scalar_lea.sflag [#allocation9], %s469_s18 }
  0xe7   : > { %s491_s13 = scalar_lea.vmem [#allocation8], %s2109_s12 }
  0xe8   : > { %1717 = dma.done.wait (%p2322_p5), %s488_s15, 64  }
  0xe9   : > { %1719 = vsyncadd (%p2322_p5), %s488_s15, 4294967232  ;;  %p2323_p7 = pmov %p2321_p3 }
  0xea   : > { %p2324_p9 = pmov %p2321_p3 }
  0xeb   : > { %1721 = dma.done.wait (%p2323_p7), [#allocation9], 256  }
  0xec   : > { %1723 = vsyncadd (%p2324_p9), [#allocation9], 4294967040  ;;  %p2325_p4 = pmov %p2321_p3 }
  0xed   : > { %p2326_p0 = pmov %p2321_p3 }
  0xee   : > { %1725 = dma.done.wait (%p2325_p4), [#allocation12], 272  }
  0xef   : > { %1727 = vsyncadd (%p2326_p0), [#allocation12], 4294967024  ;;  %v1757_v0 = vmov 0.0   ;;  %vm1758_vm0 = vmmov 0   ;;  %v1446_v1 = vld [vmem:[%s2259_s6] sm:$0xff]   ;;  %v1447_v2 = vld [vmem:[%s2259_s6 + $0x8] sm:$0xff]  }
  0xf0   : > { %1295 = vmatprep.subr.bf16.mxu1 %v1757_v0  ;;  %1287 = vmatprep.subr.bf16.mxu0 %v1757_v0  ;;  %v1448_v3 = vld [vmem:[#allocation10] sm:$0xff]   ;;  %v556_v4 = vld [vmem:[%s482_s28] sm:$0xf]  ;;  %vm581_vm1 = vcmask 261120   ;;  %v1449_v5 = vld [vmem:[#allocation10 + $0x8] sm:$0xff]   ;;  %s2327_s11 = sld [smem:[#allocation29_spill]] }
  0xf1   : > { %1299 = vmatprep.mubr.msk.bf16.mxu1 %vm1758_vm0, %v1757_v0  ;;  %1291 = vmatprep.mubr.msk.bf16.mxu0 %vm1758_vm0, %v1757_v0  ;;  %v555_v6 = vld [vmem:[%s473_s5] sm:$0xf]  ;;  %v1450_v7 = vld [vmem:[#allocation11] sm:$0xff]   ;;  %v1451_v8 = vld [vmem:[#allocation11 + $0x8] sm:$0xff]   ;;  %vm770_vm2 = vcmask 130048   ;;  %s1759_s26 = smov 112  }
  0xf2   : > { %1296 = vmatpush3.bf16.msra.mxu1 %v1446_v1  ;;  %1288 = vmatpush3.bf16.msra.mxu0 %v1448_v3  ;;  %v557_v9 = vld [vmem:[%s491_s13] sm:$0xf]  ;;  %v1247_v10 = vld [vmem:[%s2260_s7] ss:$0 sm:$0xff]  ;;  %vm887_vm3 = vcmask 1043456   ;;  %vm863_vm4 = vcmask 64512  }
  0xf3   : > { %1297 = vmatprep.subr.bf16.mxu1 %v1757_v0  ;;  %1289 = vmatprep.subr.bf16.mxu0 %v1757_v0  ;;  %v1251_v25 = vld [vmem:[#allocation13] ss:$0 sm:$0xff]  ;;  %s2328_s29 = sld [smem:[#allocation31_spill]]  ;;  %s1760_s12 = smov 16  }
  0xf4   : > { %v769_v36 = vld [vmem:[#allocation2] sm:$0xff]  ;;  %s1242_s8 = sshll.u32 %s2106_s21, 3  ;;  %s2329_s15 = sld [smem:[#allocation32_spill]] }
  0xf5   : > { %s2330_s13 = sld [smem:[#allocation25_spill]]  ;;  %s1264_s30 = sshll.u32 %s1848_s27, 7 }
  0xf6   : > { %1298 = vmatpush3.bf16.msra.mxu1 %v1447_v2  ;;  %1290 = vmatpush3.bf16.msra.mxu0 %v1449_v5  ;;  %v1243_v12 = vld [vmem:[%s2327_s11] ss:$0 sm:$0xff]  ;;  %s553_s17 = scalar_lea.vmem [#allocation14], %s1242_s8  ;;  %s2331_s20 = sld [smem:[#allocation33_spill]] }
  0xf7   : > { %1311 = vmatprep.subr.bf16.mxu1 %v1757_v0  ;;  %1303 = vmatprep.subr.bf16.mxu0 %v1757_v0  ;;  %s1068_s25 = sshll.u32 %s553_s17, 4  ;;  %s1055_s27 = scalar_lea.sflag [#allocation4], %s2106_s21  ;;  %s2210_s25 = int_to_ptr.vmem [resolvable:$true] %s1068_s25 }
  0xf8   : > { %s1664_s23 = scalar_lea.vmem %s2210_s25, 128  ;;  %s1761_s11 = smov [#allocation14]  }
  0xf9   : > { %1300 = vmatmul.mubr.msk.bf16.vlgmr.msra.gmra.mrb[0].mxu1 %vm581_vm1, %v556_v4  ;;  %1292 = vmatmul.mubr.msk.bf16.vlgmr.msra.gmra.mrb[0].mxu0 %vm581_vm1, %v555_v6  ;;  %v1452_v63 = vld [vmem:[%s2328_s29] sm:$0xff]   ;;  %v1453_v6 = vld [vmem:[%s2328_s29 + $0x8] sm:$0xff]   ;;  %p1665_p6 = scmp.ne.s32.totalorder %s2210_s25, %s1664_s23 }
  0xfa   : > { %1313 = vmatprep.mubr.msk.bf16.mxu1 %vm1758_vm0, %v1757_v0  ;;  %1307 = vmatprep.mubr.msk.bf16.mxu0 %vm1758_vm0, %v1757_v0 }
  0xfb   : > { %1304 = vmatpush3.bf16.msra.mxu0 %v1450_v7  ;;  %p2332_p1 = scmp.ne.s32.totalorder %s2330_s13, 0 }
  0xfc   : > { %1305 = vmatprep.subr.bf16.mxu0 %v1757_v0  ;;  %s2208_s19 = scalar_lea.hbm %s2331_s20, %s1264_s30 }
  0xfd   : > { %p1666_p8 = pnand %p1665_p6, %p2332_p1 }
  0xff   : > { %1306 = vmatpush3.bf16.msra.mxu0 %v1451_v8  ;;  %p1667_p12 = pneg %p1666_p8 }
 0x100   : > { %1317 = vmatprep.subr.bf16.mxu0 %v1757_v0 }
 0x102   : > { %1308 = vmatmul.mubr.msk.bf16.vlgmr.msra.gmra.mrb[4].mxu0 %vm581_vm1, %v557_v9 }
 0x103   : > { %1319 = vmatprep.mubr.msk.bf16.mxu0 %vm1758_vm0, %v1757_v0 }
 0x1cc   : > { %v686_v11 = vpop.f32.mrb[0].mxu1  ;;  %v619_v16 = vpop.f32.mrb[0].mxu0 }
 0x1cd   : > { %v687_v13 = vadd.f32 %v1247_v10, %v686_v11  ;;  %v1301_v14 = vpop.f32.mrb[1].mxu1  ;;  %v620_v19 = vadd.f32 %v1243_v12, %v619_v16  ;;  %v1293_v20 = vpop.f32.mrb[1].mxu0 }
 0x1ce   : > { %v689_v15 = vpop.f32.mrb[2].mxu1  ;;  %v622_v21 = vpop.f32.mrb[2].mxu0 }
 0x1cf   : > { %v692_v17 = vpack.c.bf16 %v687_v13, %v687_v13  ;;  %v1302_v18 = vpop.f32.mrb[3].mxu1  ;;  %v625_v23 = vpack.c.bf16 %v620_v19, %v620_v19  ;;  %v1294_v24 = vpop.f32.mrb[3].mxu0 }
 0x1d0   : > { %v1259_v18 = vld [vmem:[%s2329_s15] ss:$0 sm:$0xff] }
 0x1d1   : > { %v775_v22 = vsel %vm770_vm2, %v692_v17, 0  ;;  %764 = vrot.lane.b32.xlu0 %v692_v17, %s1759_s26 }
 0x1d2   : > { %1312 = vmatpush3.bf16.xpose.msra.mxu1 %v775_v22 }
 0x1d3   : > { %1323 = vmatprep.subr.bf16.mxu1 %v1757_v0 }
 0x1d5   : > { %761 = vrot.lane.b32.xlu0 %v625_v23, %s1759_s26  ;;  %v753_v26 = vpop.f32.mrb[4].mxu0 }
 0x1d6   : > { %v754_v27 = vadd.f32 %v1251_v25, %v753_v26  ;;  %v1309_v28 = vpop.f32.mrb[5].mxu0 }
 0x1d7   : > { %v756_v29 = vpop.f32.mrb[6].mxu0 }
 0x1d8   : > { %v759_v30 = vpack.c.bf16 %v754_v27, %v754_v27  ;;  %v1310_v31 = vpop.f32.mrb[7].mxu0 }
 0x1d9   : > { %1314 = vmatmul.mubr.msk.bf16.vlgmr.msra.gmra.mrb[4].mxu1 %vm770_vm2, %v625_v23 }
 0x1da   : > { %1325 = vmatprep.mubr.msk.bf16.mxu1 %vm1758_vm0, %v1757_v0  ;;  %v889_v32 = vsel %vm887_vm3, %v759_v30, 0 }
 0x1db   : > { %1324 = vmatpush3.bf16.msra.mxu1 %v889_v32 }
 0x1dc   : > { %1335 = vmatprep.subr.bf16.mxu1 %v1757_v0 }
 0x243   : > { %v765_v33 = vpop.permute.xlu0 %764 }
 0x244   : > { %v821_v34 = vsel %vm770_vm2, %v765_v33, 0 }
 0x245   : > { %1318 = vmatpush3.bf16.xpose.msra.mxu0 %v821_v34 }
 0x246   : > { %1329 = vmatprep.subr.bf16.mxu0 %v1757_v0 }
 0x247   : > { %v762_v35 = vpop.permute.xlu0 %761 }
 0x24c   : > { %1320 = vmatmul.mubr.msk.bf16.vlgmr.msra.gmra.mrb[8].mxu0 %vm770_vm2, %v762_v35 }
 0x24d   : > { %1331 = vmatprep.mubr.msk.bf16.mxu0 %vm1758_vm0, %v1757_v0 }
 0x2ac   : > { %v811_v37 = vpop.f32.mrb[4].mxu1 }
 0x2ad   : > { %v812_v38 = vadd.f32 %v811_v37, %v769_v36  ;;  %v1315_v39 = vpop.f32.mrb[5].mxu1 }
 0x2ae   : > { %v814_v40 = vpop.f32.mrb[6].mxu1 }
 0x2af   : > { %v1316_v41 = vpop.f32.mrb[7].mxu1  ;;  %v864_v42 = vsel %vm863_vm4, %v812_v38, -inf }
 0x2b0   : > { %865 = vmax.xlane.f32.xlu0 %v864_v42 }
 0x31f   : > { %v857_v43 = vpop.f32.mrb[8].mxu0 }
 0x320   : > { %v858_v44 = vadd.f32 %v857_v43, %v769_v36  ;;  %v1321_v45 = vpop.f32.mrb[9].mxu0 }
 0x321   : > { %v860_v46 = vpop.f32.mrb[10].mxu0 }
 0x322   : > { %v1322_v47 = vpop.f32.mrb[11].mxu0  ;;  %v867_v48 = vsel %vm863_vm4, %v858_v44, -inf }
 0x323   : > { %868 = vmax.xlane.f32.xlu1 %v867_v48 }
 0x334   : > { %767 = vrot.lane.b32.xlu1 %v759_v30, %s1759_s26  ;;  %s1668_s26 = sshll.u32 %s1761_s11, 4  ;;  %s1669_s26 = int_to_ptr.vmem [resolvable:$false] %s1668_s26 }
 0x335   : > { %s1670_s10 = scalar_lea.vmem %s1669_s26, 256  ;;  %p1671_p2 = scmp.lt.s32.totalorder %s2210_s25, %s1669_s26 }
 0x336   : > { %p1672_p11 = scmp.lt.s32.totalorder %s1670_s10, %s1664_s23 }
 0x338   : > { %p1673_p10 = por %p1672_p11, %p1671_p2 }
 0x33a   : > { %p1674_p13 = pnand %p1673_p10, %p1667_p12 }
 0x33d   : > { %v866_v49 = vpop.xlane.xlu0 %865 }
 0x33e   : > { %v870_v50 = vsub.f32 %v812_v38, %v866_v49 }
 0x340   : > { %v872_v51 = vmul.f32 1.442695, %v870_v50 }
 0x342   : > { %1454 = vpow2.f32 %v872_v51 }
 0x34c   : > { %v1455_v52 = vpop.eup %1454 }
 0x34d   : > { %v876_v53 = vsel %vm863_vm4, %v1455_v52, 0.0  ;;  %v882_v54 = vpack.c.bf16 %v1455_v52, %v1455_v52 }
 0x34e   : > { %877 = vadd.xlane.f32.xlu0 %v876_v53 }
 0x34f   : > { %1326 = vmatmul.mubr.msk.bf16.vlgmr.msra.gmra.mrb[8].mxu1 %vm863_vm4, %v882_v54 }
 0x350   : > { %1339 = vmatprep.mubr.msk.bf16.mxu1 %vm1758_vm0, %v1757_v0  ;;  %1336 = vmatpush3.bf16.msra.mxu1 %v1452_v63 }
 0x351   : > { %1337 = vmatprep.subr.bf16.mxu1 %v1757_v0 }
 0x354   : > { %1338 = vmatpush3.bf16.msra.mxu1 %v1453_v6 }
 0x3b0   : > { %v869_v55 = vpop.xlane.xlu1 %868 }
 0x3b1   : > { %v871_v56 = vsub.f32 %v858_v44, %v869_v55 }
 0x3b3   : > { %v874_v57 = vmul.f32 1.442695, %v871_v56 }
 0x3b4   : > { %v768_v58 = vpop.permute.xlu1 %767 }
 0x3b5   : > { %1456 = vpow2.f32 %v874_v57  ;;  %v935_v59 = vsel %vm887_vm3, %v768_v58, 0 }
 0x3b6   : > { %1330 = vmatpush3.bf16.msra.mxu0 %v935_v59 }
 0x3bf   : > { %v1457_v60 = vpop.eup %1456 }
 0x3c0   : > { %v879_v61 = vsel %vm863_vm4, %v1457_v60, 0.0  ;;  %v883_v62 = vpack.c.bf16 %v1457_v60, %v1457_v60 }
 0x3c1   : > { %880 = vadd.xlane.f32.xlu1 %v879_v61 }
 0x3c2   : > { %1332 = vmatmul.mubr.msk.bf16.vlgmr.msra.gmra.mrb[12].mxu0 %vm863_vm4, %v883_v62 }
 0x3db   : > { %v878_v12 = vpop.xlane.xlu0 %877 }
 0x422   : > { %v925_v1 = vpop.f32.mrb[8].mxu1 }
 0x423   : > { %v1327_v2 = vpop.f32.mrb[9].mxu1 }
 0x424   : > { %v928_v3 = vpop.f32.mrb[10].mxu1 }
 0x425   : > { %v1328_v4 = vpop.f32.mrb[11].mxu1 }
 0x44e   : > { %v881_v5 = vpop.xlane.xlu1 %880 }
 0x44f   : > { %1458 = vrcp.f32 %v881_v5 }
 0x450   : > { %1460 = vrcp.f32 %v878_v12 }
 0x459   : > { %v1459_v7 = vpop.eup %1458 }
 0x45a   : > { %v1461_v13 = vpop.eup %1460 }
 0x45b   : > { %v979_v14 = vmul.f32 %v1461_v13, %v925_v1 }
 0x495   : > { %v971_v8 = vpop.f32.mrb[12].mxu0 }
 0x496   : > { %v980_v9 = vmul.f32 %v1459_v7, %v971_v8  ;;  %v1333_v10 = vpop.f32.mrb[13].mxu0 }
 0x497   : > { %v974_v11 = vpop.f32.mrb[14].mxu0 }
 0x498   : > { %982 = vrot.lane.b32.xlu0 %v980_v9, %s1760_s12  ;;  %v1334_v0 = vpop.f32.mrb[15].mxu0 }
 0x50a   : > { %v983_v15 = vpop.permute.xlu0 %982 }
 0x50b   : > { %v985_v16 = vsel %vm770_vm2, %v979_v14, %v983_v15 }
 0x50c   : > { %v986_v17 = vpack.c.bf16 %v985_v16, %v985_v16 }
 0x50e   : > { %1340 = vmatmul.mubr.msk.bf16.vlgmr.msra.gmra.mrb[12].mxu1 %vm581_vm1, %v986_v17 }
 0x5e1   : > { %v1047_v19 = vpop.f32.mrb[12].mxu1 }
 0x5e2   : > { %v1048_v20 = vadd.f32 %v1259_v18, %v1047_v19  ;;  %v1341_v21 = vpop.f32.mrb[13].mxu1 }
 0x5e3   : > { %v1050_v22 = vpop.f32.mrb[14].mxu1 }
 0x5e4   : > { %v1342_v23 = vpop.f32.mrb[15].mxu1  ;;  %1053 = vst.msk [vmem:[%s553_s17] sm:$0xff] %vm581_vm1, %v1048_v20 }
 0x5e5   : > { %1677 = shalt.err (!%p1674_p13)
}
 0x5e6   : > { %s1678_s21 = scalar_lea.hbm %s2208_s19, 128  ;;  %s1682_s18 = scalar_lea.hbm %s2331_s20, 256 }
 0x5e7   : > { %p1679_p3 = scmp.ne.s32.totalorder %s2208_s19, %s1678_s21  ;;  %p1683_p9 = scmp.lt.u32.totalorder %s2208_s19, %s2331_s20 }
 0x5e8   : > { %p1684_p4 = scmp.lt.u32.totalorder %s1682_s18, %s1678_s21  ;;  %p1686_p6 = scmp.lt.u32.totalorder %s1678_s21, %s2208_s19 }
 0x5e9   : > { %p1680_p5 = pnand %p1679_p3, %p2332_p1 }
 0x5ea   : > { %p1685_p0 = por %p1684_p4, %p1683_p9 }
 0x5eb   : > { %p1681_p7 = pneg %p1680_p5 }
 0x5ec   : > { %p1687_p8 = por %p1686_p6, %p1685_p0 }
 0x5ee   : > { %p1688_p12 = pnand %p1687_p8, %p1681_p7 }
 0x5f0   : > { %1691 = shalt.err (!%p1688_p12)
}
 0x5f1   : > { %1365 = dma.vmem_to_hbm [thread:$0]  (%p2332_p1), %s2210_s25, 128, %s2208_s19, %s1055_s27  }
 0x5f2 PF: > { %s2333_s5 = sld [smem:[#allocation21_spill]]  ;;  %s2334_s28 = sld [smem:[#allocation26_spill]] }
 0x5f3   : > { %p2336_p11 = scmp.ge.s32.totalorder %s1746_s24, 2 }
 0x5f8   : > { %s1080_s15 = sand.u32 1, %s2333_s5   ;;  %p2335_p2 = scmp.ne.s32.totalorder %s2334_s28, 0 }
 0x5f9   : > { %s1081_s30 = scalar_lea.sflag [#allocation4], %s1080_s15 }
 0x5fa   : > { %p1391_p10 = pnand %p2336_p11, %p2335_p2 }
 0x5fc   : > { %1729 = dma.done.wait (!%p1391_p10), %s1081_s30, 128  }
 0x5fd   : > { %1731 = vsyncadd (!%p1391_p10), %s1081_s30, 4294967168  ;;  %s2337_s24 = sld [smem:[#allocation23_spill]]  ;;  %s2338_s17 = sld [smem:[#allocation22_spill]] }
 0x5fe   : > { %s2339_s23 = sld [smem:[#allocation24_spill]]  ;;  %s2340_s21 = smov %s1738_s22 }
 0x603   : > { %p30_p13 = scmp.ge.s32.totalorder %s2337_s24, 4   ;;  %s2341_s22 = smov %s2338_s17 }
 0x605   :  { %32 = sbr.rel (!%p30_p13) target bundleno = 17 (0x11), region = 154 }
 0x60c   :  { %1086 = vsyncpa [#allocation3], 1 }
 0x60d   :  { %1088 = vsyncpa [#allocation3 + $0x1], 1 }
 0x60e   :  { %1089 = vsyncpa [#allocation6], 1 }
 0x60f   :  { %1091 = vsyncpa [#allocation6 + $0x1], 1 }
 0x610   :  { %1092 = vsyncpa [#allocation9], 1 }
 0x611   :  { %1094 = vsyncpa [#allocation9 + $0x1], 1 }
 0x612   :  { %1095 = vsyncpa [#allocation12], 1 }
 0x613   :  { %1096 = vsyncpa [#allocation4], 1 }
 0x614   :  { %1098 = vsyncpa [#allocation4 + $0x1], 1 }

</bundles_post_ra>
